<compile_context>
chip_gen: v5e
topology: v5e:2x2
jax: 0.10.0
libtpu: 0.0.40
codegen_flags: <defaults>
</compile_context>

<pallas_src>
import functools

import jax
import jax.numpy as jnp
from jax.experimental import pallas as pl
from jax.experimental.pallas import tpu as pltpu


def _round_up(n, m):
    return ((n + m - 1) // m) * m


def dqn_kernel(x_ref, w_ref, b_ref, out_ref, *, n_layers, din_p, nout_p):
    """Transposed (batch-on-lanes) MLP forward.

    x_ref:   [din_p, bb]          input activations (features padded to din_p with zeros)
    w_ref:   [n_layers, nb, nb]   W_l^T, zero-padded into a uniform nb x nb slot
    b_ref:   [n_layers, nb, 1]    biases as column vectors (lane-broadcast add)
    out_ref: [nout_p, bb]         Q-values (rows >= n_action are exact zeros)
    """
    x = x_ref[...].astype(jnp.float32)

    # Layer 0: only the first din_p columns of W_0^T carry data (rest is zero padding and
    # multiplies the zero-padded feature rows of x). Static slice of a 4-vreg load.
    w0 = w_ref[0][:, :din_p]                                        # [nb, din_p]
    h = jnp.maximum(
        jnp.dot(w0, x, preferred_element_type=jnp.float32) + b_ref[0], 0.0)

    # Hidden layers 1 .. n_layers-2: Linear + ReLU (static unroll -> static ref slices).
    for i in range(1, n_layers - 1):
        h = jnp.maximum(
            jnp.dot(w_ref[i], h, preferred_element_type=jnp.float32) + b_ref[i], 0.0)

    # Output layer: only the first nout_p rows of W_last^T are meaningful.
    w_last = w_ref[n_layers - 1][:nout_p, :]                        # [nout_p, nb]
    b_last = b_ref[n_layers - 1][:nout_p]                           # [nout_p, 1]
    out_ref[...] = (
        jnp.dot(w_last, h, preferred_element_type=jnp.float32) + b_last
    ).astype(out_ref.dtype)


def dqn_forward(x, params, *, block_b=32768):
    """x: [B, state_dim] float; params: list of (W [in, out], b [1, out]) so y = x @ W + b."""
    B, state_dim = x.shape
    nb = params[0][0].shape[1]            # hidden width (32)
    n_action = params[-1][0].shape[1]     # 4
    n_layers = len(params)                # 6

    din_p = _round_up(state_dim, 8)       # 6 -> 8 sublanes
    nout_p = _round_up(n_action, 8)       # 4 -> 8 sublanes

    # --- Pack transposed weights / biases into stacked, VMEM-resident operands ---
    w_stack, b_stack = [], []
    for w, b in params:
        fin, fout = w.shape
        wt = jnp.zeros((nb, nb), jnp.float32).at[:fout, :fin].set(w.astype(jnp.float32).T)
        bt = jnp.zeros((nb, 1), jnp.float32).at[:fout, 0].set(b.reshape(-1).astype(jnp.float32))
        w_stack.append(wt)
        b_stack.append(bt)
    w_stack = jnp.stack(w_stack)          # [n_layers, nb, nb]
    b_stack = jnp.stack(b_stack)          # [n_layers, nb, 1]

    # Lane-dense transposed input: [din_p, B]; feature rows beyond state_dim are zero.
    # Batch is NOT padded — ragged last block is handled by masked partial-block DMA.
    io_dtype = x.dtype if jnp.issubdtype(x.dtype, jnp.floating) else jnp.float32
    x_t = jnp.zeros((din_p, B), io_dtype).at[:state_dim, :].set(x.astype(io_dtype).T)

    # Batch (lane) block size: multiple of 128 lanes, MiB-scale per step, and >= 2 grid
    # steps whenever possible so v7x's two TensorCores both get work.
    if B <= 128:
        bb = B                            # block last dim == full array dim (allowed)
    else:
        bb = min(block_b, _round_up(pl.cdiv(B, 2), 128))
    grid = (pl.cdiv(B, bb),)

    flops = 2 * B * sum(int(w.shape[0]) * int(w.shape[1]) for w, _ in params)
    bytes_accessed = int(
        x_t.size * x_t.dtype.itemsize
        + nout_p * B * 4
        + w_stack.size * 4
        + b_stack.size * 4
    )

    kernel = functools.partial(
        dqn_kernel, n_layers=n_layers, din_p=din_p, nout_p=nout_p)

    out_t = pl.pallas_call(
        kernel,
        out_shape=jax.ShapeDtypeStruct((nout_p, B), jnp.float32),
        grid_spec=pltpu.PrefetchScalarGridSpec(
            num_scalar_prefetch=0,
            grid=grid,
            in_specs=[
                pl.BlockSpec((din_p, bb), lambda i: (0, i)),               # x: tiled on batch lanes
                pl.BlockSpec((n_layers, nb, nb), lambda i: (0, 0, 0)),     # weights: VMEM-resident
                pl.BlockSpec((n_layers, nb, 1), lambda i: (0, 0, 0)),      # biases: VMEM-resident
            ],
            out_specs=pl.BlockSpec((nout_p, bb), lambda i: (0, i)),
        ),
        compiler_params=pltpu.CompilerParams(
            dimension_semantics=("parallel",),      # shard batch grid across TCs on v7x
            vmem_limit_bytes=32 * 1024 * 1024,      # >= scoped default on v5e/v6e/v7x, < v7x physical
        ),
        cost_estimate=pl.CostEstimate(
            flops=int(flops), transcendentals=0, bytes_accessed=bytes_accessed),
    )(x_t, w_stack, b_stack)

    # Strip the zero-padded output rows and undo the transpose.
    return out_t[:n_action, :].T


def init_params(key, state_dim, nb_neurons, n_action):
    """Deterministic init mimicking PyTorch nn.Linear default (uniform +/- 1/sqrt(fan_in))."""
    dims = [state_dim] + [nb_neurons] * 5 + [n_action]
    params = []
    for i in range(6):
        fan_in, fan_out = dims[i], dims[i + 1]
        key, kw, kb = jax.random.split(key, 3)
        bound = 1.0 / jnp.sqrt(fan_in)
        w = jax.random.uniform(kw, (fan_in, fan_out), jnp.float32, -bound, bound)
        b = jax.random.uniform(kb, (1, fan_out), jnp.float32, -bound, bound)
        params.append((w, b))
    return params


def dqn_reference(x, params):
    h = x.astype(jnp.float32)
    for i, (w, b) in enumerate(params):
        h = h @ w + b
        if i < len(params) - 1:
            h = jnp.maximum(h, 0.0)
    return h


if __name__ == "__main__":
    # HIVPatient env: observation_space.shape[0] == 6, action_space.n == 4.
    state_dim = 6
    nb_neurons = 32
    n_action = 4
    batch = 8

    key = jax.random.PRNGKey(0)
    key, kx = jax.random.split(key)
    x = jax.random.normal(kx, (batch, state_dim), jnp.float32)
    params = init_params(key, state_dim, nb_neurons, n_action)

    out = jax.block_until_ready(dqn_forward(x, params))
    ref = dqn_reference(x, params)
    assert out.shape == (batch, n_action)
    assert jnp.allclose(out, ref, atol=5e-4, rtol=5e-4), "mismatch vs reference (B=8)"

    # Ragged multi-block path: B > 128 and not a multiple of the 128-lane block,
    # exercising the masked partial last block and the >= 2-step parallel grid.
    key, kx2 = jax.random.split(key)
    x2 = jax.random.normal(kx2, (200, state_dim), jnp.float32)
    out2 = jax.block_until_ready(dqn_forward(x2, params))
    ref2 = dqn_reference(x2, params)
    assert out2.shape == (200, n_action)
    assert jnp.allclose(out2, ref2, atol=5e-4, rtol=5e-4), "mismatch vs reference (B=200)"

    print("KERNEL_OK")
</pallas_src>

<mosaic_0001>
module attributes {stable_mosaic.version = 11 : i64} {
  func.func @dqn_kernel(%arg0: i32, %arg1: memref<8x8xf32, #tpu.memory_space<vmem>>, %arg2: memref<6x32x32xf32, #tpu.memory_space<vmem>>, %arg3: memref<6x32x1xf32, #tpu.memory_space<vmem>>, %arg4: memref<8x8xf32, #tpu.memory_space<vmem>>) attributes {dimension_semantics = [#tpu.dimension_semantics<parallel>], iteration_bounds = array<i64: 1>, scalar_prefetch = 0 : i64, scratch_operands = 0 : i64, tpu.core_type = #tpu.core_type<tc>, window_params = [{transform_indices = @transform_0, window_bounds = array<i64: 8, 8>}, {pipeline_mode = #tpu.pipeline_mode<synchronous>, transform_indices = @transform_1, window_bounds = array<i64: 6, 32, 32>}, {pipeline_mode = #tpu.pipeline_mode<synchronous>, transform_indices = @transform_2, window_bounds = array<i64: 6, 32, 1>}, {transform_indices = @transform_3, window_bounds = array<i64: 8, 8>}]} {
    %c0 = arith.constant 0 : index
    %c0_0 = arith.constant 0 : index
    %0 = vector.load %arg1[%c0, %c0_0] : memref<8x8xf32, #tpu.memory_space<vmem>>, vector<8x8xf32>
    %c0_1 = arith.constant 0 : index
    %c0_2 = arith.constant 0 : index
    %c0_3 = arith.constant 0 : index
    %1 = vector.load %arg2[%c0_1, %c0_2, %c0_3] : memref<6x32x32xf32, #tpu.memory_space<vmem>>, vector<1x32x32xf32>
    %2 = vector.shape_cast %1 : vector<1x32x32xf32> to vector<32x32xf32>
    %3 = vector.extract_strided_slice %2 {offsets = [0, 0], sizes = [32, 8], strides = [1, 1]} : vector<32x32xf32> to vector<32x8xf32>
    %cst = arith.constant dense<0.000000e+00> : vector<32x8xf32>
    %4 = tpu.matmul %3, %0, %cst {dimension_numbers = #tpu.dot_dimension_numbers<[1], [0], [0], [1], [0, 0, 1, 1], [], []>} : vector<32x8xf32>, vector<8x8xf32>, vector<32x8xf32> -> vector<32x8xf32>
    %c0_4 = arith.constant 0 : index
    %c0_5 = arith.constant 0 : index
    %c0_6 = arith.constant 0 : index
    %5 = vector.load %arg3[%c0_4, %c0_5, %c0_6] : memref<6x32x1xf32, #tpu.memory_space<vmem>>, vector<1x32x1xf32>
    %6 = vector.shape_cast %5 : vector<1x32x1xf32> to vector<32x1xf32>
    %7 = vector.broadcast %6 : vector<32x1xf32> to vector<32x8xf32>
    %8 = arith.addf %4, %7 : vector<32x8xf32>
    %cst_7 = arith.constant 0.000000e+00 : f32
    %9 = vector.broadcast %cst_7 : f32 to vector<32x8xf32>
    %10 = arith.maximumf %8, %9 : vector<32x8xf32>
    %c1 = arith.constant 1 : index
    %c0_8 = arith.constant 0 : index
    %c0_9 = arith.constant 0 : index
    %11 = vector.load %arg2[%c1, %c0_8, %c0_9] : memref<6x32x32xf32, #tpu.memory_space<vmem>>, vector<1x32x32xf32>
    %12 = vector.shape_cast %11 : vector<1x32x32xf32> to vector<32x32xf32>
    %cst_10 = arith.constant dense<0.000000e+00> : vector<32x8xf32>
    %13 = tpu.matmul %12, %10, %cst_10 {dimension_numbers = #tpu.dot_dimension_numbers<[1], [0], [0], [1], [0, 0, 1, 1], [], []>} : vector<32x32xf32>, vector<32x8xf32>, vector<32x8xf32> -> vector<32x8xf32>
    %c1_11 = arith.constant 1 : index
    %c0_12 = arith.constant 0 : index
    %c0_13 = arith.constant 0 : index
    %14 = vector.load %arg3[%c1_11, %c0_12, %c0_13] : memref<6x32x1xf32, #tpu.memory_space<vmem>>, vector<1x32x1xf32>
    %15 = vector.shape_cast %14 : vector<1x32x1xf32> to vector<32x1xf32>
    %16 = vector.broadcast %15 : vector<32x1xf32> to vector<32x8xf32>
    %17 = arith.addf %13, %16 : vector<32x8xf32>
    %cst_14 = arith.constant 0.000000e+00 : f32
    %18 = vector.broadcast %cst_14 : f32 to vector<32x8xf32>
    %19 = arith.maximumf %17, %18 : vector<32x8xf32>
    %c2 = arith.constant 2 : index
    %c0_15 = arith.constant 0 : index
    %c0_16 = arith.constant 0 : index
    %20 = vector.load %arg2[%c2, %c0_15, %c0_16] : memref<6x32x32xf32, #tpu.memory_space<vmem>>, vector<1x32x32xf32>
    %21 = vector.shape_cast %20 : vector<1x32x32xf32> to vector<32x32xf32>
    %cst_17 = arith.constant dense<0.000000e+00> : vector<32x8xf32>
    %22 = tpu.matmul %21, %19, %cst_17 {dimension_numbers = #tpu.dot_dimension_numbers<[1], [0], [0], [1], [0, 0, 1, 1], [], []>} : vector<32x32xf32>, vector<32x8xf32>, vector<32x8xf32> -> vector<32x8xf32>
    %c2_18 = arith.constant 2 : index
    %c0_19 = arith.constant 0 : index
    %c0_20 = arith.constant 0 : index
    %23 = vector.load %arg3[%c2_18, %c0_19, %c0_20] : memref<6x32x1xf32, #tpu.memory_space<vmem>>, vector<1x32x1xf32>
    %24 = vector.shape_cast %23 : vector<1x32x1xf32> to vector<32x1xf32>
    %25 = vector.broadcast %24 : vector<32x1xf32> to vector<32x8xf32>
    %26 = arith.addf %22, %25 : vector<32x8xf32>
    %cst_21 = arith.constant 0.000000e+00 : f32
    %27 = vector.broadcast %cst_21 : f32 to vector<32x8xf32>
    %28 = arith.maximumf %26, %27 : vector<32x8xf32>
    %c3 = arith.constant 3 : index
    %c0_22 = arith.constant 0 : index
    %c0_23 = arith.constant 0 : index
    %29 = vector.load %arg2[%c3, %c0_22, %c0_23] : memref<6x32x32xf32, #tpu.memory_space<vmem>>, vector<1x32x32xf32>
    %30 = vector.shape_cast %29 : vector<1x32x32xf32> to vector<32x32xf32>
    %cst_24 = arith.constant dense<0.000000e+00> : vector<32x8xf32>
    %31 = tpu.matmul %30, %28, %cst_24 {dimension_numbers = #tpu.dot_dimension_numbers<[1], [0], [0], [1], [0, 0, 1, 1], [], []>} : vector<32x32xf32>, vector<32x8xf32>, vector<32x8xf32> -> vector<32x8xf32>
    %c3_25 = arith.constant 3 : index
    %c0_26 = arith.constant 0 : index
    %c0_27 = arith.constant 0 : index
    %32 = vector.load %arg3[%c3_25, %c0_26, %c0_27] : memref<6x32x1xf32, #tpu.memory_space<vmem>>, vector<1x32x1xf32>
    %33 = vector.shape_cast %32 : vector<1x32x1xf32> to vector<32x1xf32>
    %34 = vector.broadcast %33 : vector<32x1xf32> to vector<32x8xf32>
    %35 = arith.addf %31, %34 : vector<32x8xf32>
    %cst_28 = arith.constant 0.000000e+00 : f32
    %36 = vector.broadcast %cst_28 : f32 to vector<32x8xf32>
    %37 = arith.maximumf %35, %36 : vector<32x8xf32>
    %c4 = arith.constant 4 : index
    %c0_29 = arith.constant 0 : index
    %c0_30 = arith.constant 0 : index
    %38 = vector.load %arg2[%c4, %c0_29, %c0_30] : memref<6x32x32xf32, #tpu.memory_space<vmem>>, vector<1x32x32xf32>
    %39 = vector.shape_cast %38 : vector<1x32x32xf32> to vector<32x32xf32>
    %cst_31 = arith.constant dense<0.000000e+00> : vector<32x8xf32>
    %40 = tpu.matmul %39, %37, %cst_31 {dimension_numbers = #tpu.dot_dimension_numbers<[1], [0], [0], [1], [0, 0, 1, 1], [], []>} : vector<32x32xf32>, vector<32x8xf32>, vector<32x8xf32> -> vector<32x8xf32>
    %c4_32 = arith.constant 4 : index
    %c0_33 = arith.constant 0 : index
    %c0_34 = arith.constant 0 : index
    %41 = vector.load %arg3[%c4_32, %c0_33, %c0_34] : memref<6x32x1xf32, #tpu.memory_space<vmem>>, vector<1x32x1xf32>
    %42 = vector.shape_cast %41 : vector<1x32x1xf32> to vector<32x1xf32>
    %43 = vector.broadcast %42 : vector<32x1xf32> to vector<32x8xf32>
    %44 = arith.addf %40, %43 : vector<32x8xf32>
    %cst_35 = arith.constant 0.000000e+00 : f32
    %45 = vector.broadcast %cst_35 : f32 to vector<32x8xf32>
    %46 = arith.maximumf %44, %45 : vector<32x8xf32>
    %c5 = arith.constant 5 : index
    %c0_36 = arith.constant 0 : index
    %c0_37 = arith.constant 0 : index
    %47 = vector.load %arg2[%c5, %c0_36, %c0_37] : memref<6x32x32xf32, #tpu.memory_space<vmem>>, vector<1x32x32xf32>
    %48 = vector.shape_cast %47 : vector<1x32x32xf32> to vector<32x32xf32>
    %49 = vector.extract_strided_slice %48 {offsets = [0, 0], sizes = [8, 32], strides = [1, 1]} : vector<32x32xf32> to vector<8x32xf32>
    %c5_38 = arith.constant 5 : index
    %c0_39 = arith.constant 0 : index
    %c0_40 = arith.constant 0 : index
    %50 = vector.load %arg3[%c5_38, %c0_39, %c0_40] : memref<6x32x1xf32, #tpu.memory_space<vmem>>, vector<1x32x1xf32>
    %51 = vector.shape_cast %50 : vector<1x32x1xf32> to vector<32x1xf32>
    %52 = vector.extract_strided_slice %51 {offsets = [0, 0], sizes = [8, 1], strides = [1, 1]} : vector<32x1xf32> to vector<8x1xf32>
    %cst_41 = arith.constant dense<0.000000e+00> : vector<8x8xf32>
    %53 = tpu.matmul %49, %46, %cst_41 {dimension_numbers = #tpu.dot_dimension_numbers<[1], [0], [0], [1], [0, 0, 1, 1], [], []>} : vector<8x32xf32>, vector<32x8xf32>, vector<8x8xf32> -> vector<8x8xf32>
    %54 = vector.broadcast %52 : vector<8x1xf32> to vector<8x8xf32>
    %55 = arith.addf %53, %54 : vector<8x8xf32>
    %c0_42 = arith.constant 0 : index
    %c0_43 = arith.constant 0 : index
    %56 = vector.load %arg4[%c0_42, %c0_43] : memref<8x8xf32, #tpu.memory_space<vmem>>, vector<8x8xf32>
    tpu.vector_store %arg4[%c0_42, %c0_43], %55 {strides = array<i32>} : memref<8x8xf32, #tpu.memory_space<vmem>>, vector<8x8xf32>,
    return
  }
  func.func @transform_0(%arg0: i32) -> (i32, i32) {
    %c0_i32 = arith.constant 0 : i32
    %c0_i32_0 = arith.constant 0 : i32
    return %c0_i32, %arg0 : i32, i32
  }
  func.func @transform_1(%arg0: i32) -> (i32, i32, i32) {
    %c0_i32 = arith.constant 0 : i32
    %c0_i32_0 = arith.constant 0 : i32
    %c0_i32_1 = arith.constant 0 : i32
    %c0_i32_2 = arith.constant 0 : i32
    return %c0_i32, %c0_i32_0, %c0_i32_1 : i32, i32, i32
  }
  func.func @transform_2(%arg0: i32) -> (i32, i32, i32) {
    %c0_i32 = arith.constant 0 : i32
    %c0_i32_0 = arith.constant 0 : i32
    %c0_i32_1 = arith.constant 0 : i32
    %c0_i32_2 = arith.constant 0 : i32
    return %c0_i32, %c0_i32_0, %c0_i32_1 : i32, i32, i32
  }
  func.func @transform_3(%arg0: i32) -> (i32, i32) {
    %c0_i32 = arith.constant 0 : i32
    %c0_i32_0 = arith.constant 0 : i32
    return %c0_i32, %arg0 : i32, i32
  }
}

</mosaic_0001>

<bundles_post_ra>
// kernel: tpu_custom_call.1
= control target key start
LH: loop header
LB: loop body
LE: loop exit
PB: predicated region body
PF: predicated region fallthrough
CT: control target
= control target key end

     0   :  { %8 = vsyncpa [#allocation3], 0  ;;  %s747_s0 = inlined_call_operand.hbm [shape: f32[8,8], index: 0, kind: input, shape index: {}]   ;;  %s748_s1 = inlined_call_operand.vmem [shape: f32[6,32,32], index: 1, kind: input, shape index: {}]   ;;  %s749_s2 = inlined_call_operand.vmem [shape: f32[6,32,1], index: 2, kind: input, shape index: {}]   ;;  %s750_s3 = inlined_call_operand.hbm [shape: f32[8,8], index: 3, kind: output, shape index: {}]  }
   0x1   :  { %9 = vsyncpa [#allocation4], 0  ;;  %s15_s14 = sshll.u32 %s747_s0, 4  ;;  %s570_s15 = smov [#allocation2]   ;;  %s16_s14 = int_to_ptr.hbm [resolvable:$true] %s15_s14 }
   0x2   :  { %s17_s16 = sshll.u32 %s570_s15, 4  ;;  %s18_s16 = int_to_ptr.vmem [resolvable:$true] %s17_s16 }
   0x3   :  { %20 = dma.hbm_to_vmem [thread:$0]  %s16_s14, 128, %s18_s16, [#allocation3]  }
   0x4   :  { %566 = dma.done.wait [#allocation3], 128  }
   0x5   :  { %567 = vsyncadd [#allocation3], 4294967168  ;;  %v571_v0 = vmov 0   ;;  %v37_v1 = vld [vmem:[%s749_s2 + $0x18] sm:$0xff]  ;;  %v35_v2 = vld [vmem:[%s749_s2 + $0x8] sm:$0xff]  ;;  %vm58_vm0 = vcmask 64512  }
   0x6   :  { %516 = vset.pattern.permute.xlu1 %v571_v0  ;;  %515 = vset.pattern.permute.xlu0 %v571_v0  ;;  %v29_v3 = vld [vmem:[#allocation2] sm:$0xff]  ;;  %v31_v4 = vld [vmem:[%s748_s1 + $0x8] sm:$0xff]  ;;  %v33_v5 = vld [vmem:[%s748_s1 + $0x18] sm:$0xff]  ;;  %vm134_vm1 = vcmask 261120   ;;  %s572_s16 = smov [#allocation5]   ;;  %s445_s19 = sshll.u32 %s750_s3, 4  ;;  %s446_s19 = int_to_ptr.hbm [resolvable:$true] %s445_s19 }
   0x7   :  { %517 = vset.pattern.permute.xlu2 %v571_v0  ;;  %55 = vperm.xlu0 %515, %v37_v1   ;;  %v30_v6 = vld [vmem:[%s748_s1] sm:$0xff]  ;;  %v36_v7 = vld [vmem:[%s749_s2 + $0x10] sm:$0xff]  ;;  %v464_v10 = vld [vmem:[%s749_s2 + $0x28] sm:$0xff]  ;;  %s443_s17 = sshll.u32 %s572_s16, 4  ;;  %s444_s17 = int_to_ptr.vmem [resolvable:$true] %s443_s17 }
   0x8   :  { %45 = vperm.xlu1 %516, %v35_v2   ;;  %510 = vmatpush.msra.mxu2 %v29_v3  ;;  %v34_v8 = vld [vmem:[%s749_s2] sm:$0xff]  ;;  %v32_v9 = vld [vmem:[%s748_s1 + $0x10] sm:$0xff]  ;;  %v476_v13 = vld [vmem:[%s749_s2 + $0x48] sm:$0xff] }
   0x9   :  { %511 = vmatpush.msra.mxu3 %v29_v3  ;;  %456 = vmatmul.msk.f32.vlgmr.msra.gmra.mxu2 %vm58_vm0, %v31_v4  ;;  %v463_v11 = vld [vmem:[%s749_s2 + $0x20] sm:$0xff]  ;;  %v477_v12 = vld [vmem:[%s749_s2 + $0x50] sm:$0xff]  ;;  %v490_v14 = vld [vmem:[%s749_s2 + $0x78] sm:$0xff] }
   0xa   :  { %458 = vmatmul.msk.f32.vlgmr.msra.gmra.mxu3 %vm58_vm0, %v33_v5  ;;  %86 = vmatpush.msra.mxu0 %v29_v3  ;;  %v489_v15 = vld [vmem:[%s749_s2 + $0x70] sm:$0xff]  ;;  %v487_v16 = vld [vmem:[%s749_s2 + $0x60] sm:$0xff]  ;;  %v502_v17 = vld [vmem:[%s749_s2 + $0x98] sm:$0xff] }
   0xb   :  { %455 = vmatmul.msk.f32.vlgmr.msra.gmra.mxu0 %vm58_vm0, %v30_v6  ;;  %v500_v18 = vld [vmem:[%s749_s2 + $0x88] sm:$0xff]  ;;  %v499_v19 = vld [vmem:[%s749_s2 + $0x80] sm:$0xff]  ;;  %v466_v20 = vld [vmem:[%s749_s2 + $0x38] sm:$0xff] }
   0xc   :  { %131 = vperm.xlu2 %517, %v466_v20   ;;  %v465_v22 = vld [vmem:[%s749_s2 + $0x30] sm:$0xff]  ;;  %v478_v28 = vld [vmem:[%s749_s2 + $0x58] sm:$0xff]  ;;  %v475_v37 = vld [vmem:[%s749_s2 + $0x40] sm:$0xff] }
   0xd   :  { %v459_v40 = vld [vmem:[%s748_s1 + $0x20] sm:$0xff]  ;;  %v488_v41 = vld [vmem:[%s749_s2 + $0x68] sm:$0xff]  ;;  %v501_v43 = vld [vmem:[%s749_s2 + $0x90] sm:$0xff] }
   0xe   :  { %v460_v42 = vld [vmem:[%s748_s1 + $0x28] sm:$0xff]  ;;  %v461_v44 = vld [vmem:[%s748_s1 + $0x30] sm:$0xff]  ;;  %v508_v45 = vld [vmem:[%s749_s2 + $0xa0] sm:$0xff] }
   0xf   :  { %50 = vperm.xlu0 %515, %v36_v7   ;;  %v462_v46 = vld [vmem:[%s748_s1 + $0x38] sm:$0xff]  ;;  %v471_v63 = vld [vmem:[%s748_s1 + $0x40] sm:$0xff]  ;;  %v472_v0 = vld [vmem:[%s748_s1 + $0x48] sm:$0xff] }
  0x10   :  { %40 = vperm.xlu1 %516, %v34_v8   ;;  %v473_v1 = vld [vmem:[%s748_s1 + $0x50] sm:$0xff]  ;;  %v474_v2 = vld [vmem:[%s748_s1 + $0x58] sm:$0xff]  ;;  %v484_v20 = vld [vmem:[%s748_s1 + $0x68] sm:$0xff] }
  0x11   :  { %457 = vmatmul.msk.f32.gmra.mxu2 %vm58_vm0, %v32_v9 }
  0x14   :  { %126 = vperm.xlu2 %517, %v465_v22   ;;  %v486_v22 = vld [vmem:[%s748_s1 + $0x78] sm:$0xff] }
  0x17   :  { %121 = vperm.xlu0 %515, %v464_v10  }
  0x18   :  { %116 = vperm.xlu1 %516, %v463_v11  }
  0x1c   :  { %207 = vperm.xlu2 %517, %v478_v28  }
  0x1f   :  { %202 = vperm.xlu0 %515, %v477_v12  }
  0x20   :  { %197 = vperm.xlu1 %516, %v476_v13  }
  0x24   :  { %192 = vperm.xlu2 %517, %v475_v37  }
  0x27   :  { %282 = vperm.xlu0 %515, %v490_v14  }
  0x28   :  { %277 = vperm.xlu1 %516, %v489_v15  }
  0x2c   :  { %272 = vperm.xlu2 %517, %v488_v41   ;;  %v497_v41 = vld [vmem:[%s748_s1 + $0x90] sm:$0xff] }
  0x2f   :  { %267 = vperm.xlu0 %515, %v487_v16  }
  0x30   :  { %357 = vperm.xlu1 %516, %v502_v17  }
  0x34   :  { %352 = vperm.xlu2 %517, %v501_v43  }
  0x37   :  { %347 = vperm.xlu0 %515, %v500_v18  }
  0x38   :  { %342 = vperm.xlu1 %516, %v499_v19   ;;  %v483_v19 = vld [vmem:[%s748_s1 + $0x60] sm:$0xff] }
  0x3c   :  { %411 = vperm.xlu2 %517, %v508_v45  }
  0x66   :  { %v132_v49 = vpop.permute.xlu2 %131 }
  0x6e   :  { %v127_v51 = vpop.permute.xlu2 %126 }
  0x76   :  { %v208_v6 = vpop.permute.xlu2 %207 }
  0x79   :  { %v56_v21 = vpop.permute.xlu0 %55 }
  0x7a   :  { %v46_v23 = vpop.permute.xlu1 %45 }
  0x7e   :  { %v193_v14 = vpop.permute.xlu2 %192 }
  0x81   :  { %v51_v29 = vpop.permute.xlu0 %50 }
  0x82   :  { %v41_v34 = vpop.permute.xlu1 %40 }
  0x88   :  { %v88_v30 = vpop.f32.mrf.mxu0 }
  0x89   :  { %v89_v35 = vadd.f32 %v88_v30, %v41_v34  ;;  %v122_v55 = vpop.permute.xlu0 %121 }
  0x8a   :  { %v117_v58 = vpop.permute.xlu1 %116 }
  0x8b   :  { %v100_v39 = vmax.f32 %v89_v35, 0.0 }
  0x8c   :  { %v91_v24 = vpop.f32.mrf.mxu2 }
  0x8d   :  { %v97_v25 = vpop.f32.mrf.mxu3  ;;  %v92_v32 = vadd.f32 %v91_v24, %v46_v23 }
  0x8e   :  { %v98_v26 = vadd.f32 %v97_v25, %v56_v21  ;;  %v485_v21 = vld [vmem:[%s748_s1 + $0x70] sm:$0xff] }
  0x8f   :  { %v101_v38 = vmax.f32 %v92_v32, 0.0 }
  0x90   :  { %v103_v27 = vmax.f32 %v98_v26, 0.0 }
  0x91   :  { %v203_v7 = vpop.permute.xlu0 %202 }
  0x92   :  { %159 = vmatpush.msra.mxu1 %v103_v27  ;;  %v198_v11 = vpop.permute.xlu1 %197 }
  0x94   :  { %v94_v31 = vpop.f32.mrf.mxu2 }
  0x95   :  { %v95_v33 = vadd.f32 %v94_v31, %v51_v29  ;;  %v273_v31 = vpop.permute.xlu2 %272 }
  0x97   :  { %v102_v36 = vmax.f32 %v95_v33, 0.0 }
  0x99   :  { %160 = vmatpush.msra.mxu1 %v102_v36  ;;  %v283_v26 = vpop.permute.xlu0 %282 }
  0x9a   :  { %v278_v27 = vpop.permute.xlu1 %277 }
  0x9b   :  { %161 = vmatpush.msra.mxu1 %v101_v38 }
  0x9d   :  { %162 = vmatpush.msra.mxu1 %v100_v39  ;;  %v495_v39 = vld [vmem:[%s748_s1 + $0x80] sm:$0xff] }
  0x9e   :  { %467 = vmatmul.msk.f32.vlgmr.msra.gmra.mxu1 %vm134_vm1, %v459_v40  ;;  %v496_v40 = vld [vmem:[%s748_s1 + $0x88] sm:$0xff] }
  0xa1   :  { %v268_v34 = vpop.permute.xlu0 %267 }
  0xa6   :  { %468 = vmatmul.msk.f32.gmra.mxu1 %vm134_vm1, %v460_v42  ;;  %v498_v42 = vld [vmem:[%s748_s1 + $0x98] sm:$0xff] }
  0xae   :  { %469 = vmatmul.msk.f32.gmra.mxu1 %vm134_vm1, %v461_v44 }
  0xb6   :  { %470 = vmatmul.msk.f32.gmra.mxu1 %vm134_vm1, %v462_v46  ;;  %v358_v46 = vpop.permute.xlu1 %357 }
 0x11b   :  { %v164_v47 = vpop.f32.mrf.mxu1 }
 0x11c   :  { %v165_v59 = vadd.f32 %v164_v47, %v117_v58  ;;  %v353_v47 = vpop.permute.xlu2 %352 }
 0x11e   :  { %v176_v62 = vmax.f32 %v165_v59, 0.0  ;;  %v507_v59 = vld [vmem:[%s748_s1 + $0xa0] sm:$0xff] }
 0x123   :  { %v167_v48 = vpop.f32.mrf.mxu1 }
 0x124   :  { %v168_v56 = vadd.f32 %v167_v48, %v122_v55 }
 0x126   :  { %v177_v61 = vmax.f32 %v168_v56, 0.0 }
 0x12b   :  { %v170_v50 = vpop.f32.mrf.mxu1 }
 0x12c   :  { %v171_v53 = vadd.f32 %v170_v50, %v127_v51  ;;  %v348_v51 = vpop.permute.xlu0 %347 }
 0x12e   :  { %v178_v60 = vmax.f32 %v171_v53, 0.0 }
 0x133   :  { %v173_v52 = vpop.f32.mrf.mxu1 }
 0x134   :  { %v174_v54 = vadd.f32 %v173_v52, %v132_v49 }
 0x136   :  { %v179_v57 = vmax.f32 %v174_v54, 0.0  ;;  %v343_v54 = vpop.permute.xlu1 %342 }
 0x138   :  { %234 = vmatpush.msrb.mxu2 %v179_v57 }
 0x13a   :  { %235 = vmatpush.msrb.mxu2 %v178_v60  ;;  %v412_v60 = vpop.permute.xlu2 %411 }
 0x13c   :  { %236 = vmatpush.msrb.mxu2 %v177_v61 }
 0x13e   :  { %237 = vmatpush.msrb.mxu2 %v176_v62 }
 0x13f   :  { %479 = vmatmul.msk.f32.vlgmr.msrb.gmra.mxu2 %vm134_vm1, %v471_v63 }
 0x147   :  { %480 = vmatmul.msk.f32.gmra.mxu2 %vm134_vm1, %v472_v0 }
 0x14f   :  { %481 = vmatmul.msk.f32.gmra.mxu2 %vm134_vm1, %v473_v1 }
 0x157   :  { %482 = vmatmul.msk.f32.gmra.mxu2 %vm134_vm1, %v474_v2 }
 0x1c2   :  { %v239_v3 = vpop.f32.mrf.mxu2 }
 0x1c3   :  { %v240_v15 = vadd.f32 %v239_v3, %v193_v14 }
 0x1c5   :  { %v251_v18 = vmax.f32 %v240_v15, 0.0 }
 0x1ca   :  { %v242_v4 = vpop.f32.mrf.mxu2 }
 0x1cb   :  { %v243_v12 = vadd.f32 %v242_v4, %v198_v11 }
 0x1cd   :  { %v252_v17 = vmax.f32 %v243_v12, 0.0 }
 0x1d2   :  { %v245_v5 = vpop.f32.mrf.mxu2 }
 0x1d3   :  { %v246_v9 = vadd.f32 %v245_v5, %v203_v7 }
 0x1d5   :  { %v253_v16 = vmax.f32 %v246_v9, 0.0 }
 0x1da   :  { %v248_v8 = vpop.f32.mrf.mxu2 }
 0x1db   :  { %v249_v10 = vadd.f32 %v248_v8, %v208_v6 }
 0x1dd   :  { %v254_v13 = vmax.f32 %v249_v10, 0.0 }
 0x1df   :  { %309 = vmatpush.msrb.mxu3 %v254_v13 }
 0x1e1   :  { %310 = vmatpush.msrb.mxu3 %v253_v16 }
 0x1e3   :  { %311 = vmatpush.msrb.mxu3 %v252_v17 }
 0x1e5   :  { %312 = vmatpush.msrb.mxu3 %v251_v18 }
 0x1e6   :  { %491 = vmatmul.msk.f32.vlgmr.msrb.gmra.mxu3 %vm134_vm1, %v483_v19 }
 0x1ee   :  { %492 = vmatmul.msk.f32.gmra.mxu3 %vm134_vm1, %v484_v20 }
 0x1f6   :  { %493 = vmatmul.msk.f32.gmra.mxu3 %vm134_vm1, %v485_v21 }
 0x1fe   :  { %494 = vmatmul.msk.f32.gmra.mxu3 %vm134_vm1, %v486_v22 }
 0x269   :  { %v314_v23 = vpop.f32.mrf.mxu3 }
 0x26a   :  { %v315_v35 = vadd.f32 %v314_v23, %v268_v34 }
 0x26c   :  { %v326_v38 = vmax.f32 %v315_v35, 0.0 }
 0x271   :  { %v317_v24 = vpop.f32.mrf.mxu3 }
 0x272   :  { %v318_v32 = vadd.f32 %v317_v24, %v273_v31 }
 0x274   :  { %v327_v37 = vmax.f32 %v318_v32, 0.0 }
 0x279   :  { %v320_v25 = vpop.f32.mrf.mxu3 }
 0x27a   :  { %v321_v29 = vadd.f32 %v320_v25, %v278_v27 }
 0x27c   :  { %v328_v36 = vmax.f32 %v321_v29, 0.0 }
 0x281   :  { %v323_v28 = vpop.f32.mrf.mxu3 }
 0x282   :  { %v324_v30 = vadd.f32 %v323_v28, %v283_v26 }
 0x284   :  { %v329_v33 = vmax.f32 %v324_v30, 0.0 }
 0x286   :  { %384 = vmatpush.msrb.mxu0 %v329_v33 }
 0x288   :  { %385 = vmatpush.msrb.mxu0 %v328_v36 }
 0x28a   :  { %386 = vmatpush.msrb.mxu0 %v327_v37 }
 0x28c   :  { %387 = vmatpush.msrb.mxu0 %v326_v38 }
 0x28d   :  { %503 = vmatmul.msk.f32.vlgmr.msrb.gmra.mxu0 %vm134_vm1, %v495_v39 }
 0x295   :  { %504 = vmatmul.msk.f32.gmra.mxu0 %vm134_vm1, %v496_v40 }
 0x29d   :  { %505 = vmatmul.msk.f32.gmra.mxu0 %vm134_vm1, %v497_v41 }
 0x2a5   :  { %506 = vmatmul.msk.f32.gmra.mxu0 %vm134_vm1, %v498_v42 }
 0x30a   :  { %v389_v43 = vpop.f32.mrf.mxu0 }
 0x30b   :  { %v390_v55 = vadd.f32 %v389_v43, %v343_v54 }
 0x30d   :  { %v401_v58 = vmax.f32 %v390_v55, 0.0 }
 0x312   :  { %v392_v44 = vpop.f32.mrf.mxu0 }
 0x313   :  { %v393_v52 = vadd.f32 %v392_v44, %v348_v51 }
 0x315   :  { %v402_v57 = vmax.f32 %v393_v52, 0.0 }
 0x31a   :  { %v395_v45 = vpop.f32.mrf.mxu0 }
 0x31b   :  { %v396_v49 = vadd.f32 %v395_v45, %v353_v47 }
 0x31d   :  { %v403_v56 = vmax.f32 %v396_v49, 0.0 }
 0x322   :  { %v398_v48 = vpop.f32.mrf.mxu0 }
 0x323   :  { %v399_v50 = vadd.f32 %v398_v48, %v358_v46 }
 0x325   :  { %v404_v53 = vmax.f32 %v399_v50, 0.0 }
 0x327   :  { %429 = vmatpush.msrb.mxu1 %v404_v53 }
 0x329   :  { %430 = vmatpush.msrb.mxu1 %v403_v56 }
 0x32b   :  { %431 = vmatpush.msrb.mxu1 %v402_v57 }
 0x32d   :  { %432 = vmatpush.msrb.mxu1 %v401_v58 }
 0x32e   :  { %509 = vmatmul.msk.f32.vlgmr.msrb.gmra.mxu1 %vm134_vm1, %v507_v59 }
 0x3ab   :  { %v434_v61 = vpop.f32.mrf.mxu1 }
 0x3ac   :  { %v435_v62 = vadd.f32 %v434_v61, %v412_v60 }
 0x3ae   :  { %437 = vst.msk [vmem:[#allocation5] sm:$0xff] %vm58_vm0, %v435_v62 }
 0x3af   :  { %448 = dma.vmem_to_hbm [thread:$0]  %s444_s17, 128, %s446_s19, [#allocation4]  }
 0x3b0   :  { %568 = dma.done.wait [#allocation4], 128  }
 0x3b1   :  { %569 = vsyncadd [#allocation4], 4294967168 }
 0x3b2   :  { %453 = vsyncpa [#allocation3], 1 }
 0x3b3   :  { %454 = vsyncpa [#allocation4], 1 }

</bundles_post_ra>
